<compile_context>
chip_gen: v7x
topology: tpu7x:2x2x1
jax: 0.10.0
libtpu: 0.0.40
codegen_flags: <defaults>
</compile_context>

<pallas_src>
import jax
import jax.numpy as jnp
from jax.experimental import pallas as pl
from jax.experimental.pallas import tpu as pltpu


def actor_kernel(s_ref, wfc_ref, whead_ref, bias_ref, eps_ref, out_ref):
    # s_ref:    (in_dim, TB)        f32   state, batch on lanes
    # wfc_ref:  (HID,    in_dim)    bf16  fc weight (PyTorch layout, hidden padded)
    # whead_ref:(2*out,  HID)       bf16  [W_mu; W_log_std]
    # bias_ref: (HID+2*out, 1)      f32   [b_fc ; b_mu ; b_log_std] column slab
    # eps_ref:  (out, TB)           f32   standard-normal noise
    # out_ref:  (3*out, TB)         f32   [action ; mu ; std]
    hid = wfc_ref.shape[0]
    two_out = whead_ref.shape[0]
    out = two_out // 2

    b_fc = bias_ref[0:hid, :]                    # (HID, 1)
    b_hd = bias_ref[hid:hid + two_out, :]        # (2*out, 1)

    # Hidden layer: relu(W_fc @ s + b_fc), bf16 MXU matmul, f32 accumulate.
    s = s_ref[...].astype(jnp.bfloat16)
    h = jnp.dot(wfc_ref[...], s, preferred_element_type=jnp.float32) + b_fc
    h = jnp.maximum(h, 0.0)                      # (HID, TB)

    # Fused mu / log_std heads: one matmul, one tanh over (2*out, TB).
    heads = jnp.tanh(
        jnp.dot(whead_ref[...], h.astype(jnp.bfloat16),
                preferred_element_type=jnp.float32) + b_hd)

    mu = heads[0:out, :]
    std = jnp.exp(heads[out:two_out, :])
    act = mu + std * eps_ref[...]                # reparameterized sample

    out_ref[0:out, :] = act
    out_ref[out:2 * out, :] = mu
    out_ref[2 * out:3 * out, :] = std


def continuous_actor_forward(state, params, eps, *, tile_b=512):
    """Fused actor forward. Returns (action, (mu, std))."""
    B, in_dim = state.shape
    w_fc = params["w_fc_t"]            # (HID, in_dim) bf16
    w_head = params["w_head_t"]        # (2*out, HID)  bf16
    bias = params["bias"]              # (HID + 2*out, 1) f32
    hid = w_fc.shape[0]
    out_dim = w_head.shape[0] // 2

    # Transposed, lane-dense layout: batch on the lane axis.
    state_t = state.T                  # (in_dim, B)
    eps_t = eps.T                      # (out_dim, B)

    if B <= tile_b:
        tb = B
        Bp = B
    else:
        tb = tile_b
        pad = (-B) % tb
        if pad:
            state_t = jnp.pad(state_t, ((0, 0), (0, pad)))
            eps_t = jnp.pad(eps_t, ((0, 0), (0, pad)))
        Bp = B + pad
    grid = (Bp // tb,)

    nbytes = lambda a: int(a.size) * a.dtype.itemsize
    cost = pl.CostEstimate(
        flops=int(2 * Bp * (in_dim * hid + hid * 2 * out_dim)),
        transcendentals=int(3 * Bp * out_dim),
        bytes_accessed=int(nbytes(state_t) + nbytes(eps_t) + nbytes(w_fc)
                           + nbytes(w_head) + nbytes(bias)
                           + 3 * out_dim * Bp * 4),
    )

    packed = pl.pallas_call(
        actor_kernel,
        out_shape=jax.ShapeDtypeStruct((3 * out_dim, Bp), jnp.float32),
        grid_spec=pltpu.PrefetchScalarGridSpec(
            num_scalar_prefetch=0,
            grid=grid,
            in_specs=[
                pl.BlockSpec((in_dim, tb), lambda i: (0, i)),            # state
                pl.BlockSpec((hid, in_dim), lambda i: (0, 0)),           # w_fc (resident)
                pl.BlockSpec((2 * out_dim, hid), lambda i: (0, 0)),      # w_head (resident)
                pl.BlockSpec((hid + 2 * out_dim, 1), lambda i: (0, 0)),  # bias slab (resident)
                pl.BlockSpec((out_dim, tb), lambda i: (0, i)),           # eps
            ],
            out_specs=pl.BlockSpec((3 * out_dim, tb), lambda i: (0, i)),
        ),
        compiler_params=pltpu.CompilerParams(
            dimension_semantics=("parallel",)),
        cost_estimate=cost,
    )(state_t, w_fc, w_head, bias, eps_t)

    packed = packed[:, :B]
    action = packed[0:out_dim].T
    mu = packed[out_dim:2 * out_dim].T
    std = packed[2 * out_dim:3 * out_dim].T
    return action, (mu, std)


def init_params(key, input_dim, output_dim, hidden=32, hidden_pad=128):
    """PyTorch nn.Linear-style init (uniform +-1/sqrt(fan_in)), then padded,
    head-fused, bias-packed, and cast to bf16 for the kernel."""
    ks = jax.random.split(key, 6)

    def u(k, shape, fan_in):
        bound = float(fan_in) ** -0.5
        return jax.random.uniform(k, shape, jnp.float32, -bound, bound)

    w_fc = u(ks[0], (hidden, input_dim), input_dim)   # PyTorch (out, in) layout
    b_fc = u(ks[1], (hidden,), input_dim)
    w_mu = u(ks[2], (output_dim, hidden), hidden)
    b_mu = u(ks[3], (output_dim,), hidden)
    w_ls = u(ks[4], (output_dim, hidden), hidden)
    b_ls = u(ks[5], (output_dim,), hidden)

    # Pad hidden 32 -> 128 with zeros (exact no-op on the math).
    w_fc_t = jnp.zeros((hidden_pad, input_dim), jnp.float32).at[:hidden].set(w_fc)
    w_head_t = jnp.zeros((2 * output_dim, hidden_pad), jnp.float32)
    w_head_t = w_head_t.at[:output_dim, :hidden].set(w_mu)
    w_head_t = w_head_t.at[output_dim:, :hidden].set(w_ls)

    bias = jnp.zeros((hidden_pad + 2 * output_dim, 1), jnp.float32)
    bias = bias.at[:hidden, 0].set(b_fc)
    bias = bias.at[hidden_pad:hidden_pad + output_dim, 0].set(b_mu)
    bias = bias.at[hidden_pad + output_dim:, 0].set(b_ls)

    return {"w_fc_t": w_fc_t.astype(jnp.bfloat16),
            "w_head_t": w_head_t.astype(jnp.bfloat16),
            "bias": bias}


if __name__ == "__main__":
    key = jax.random.PRNGKey(0)
    k_params, k_state, k_eps = jax.random.split(key, 3)

    batch = 2
    input_dim = 16   # state dimension
    output_dim = 4   # action dimension

    params = init_params(k_params, input_dim, output_dim)
    state = jax.random.normal(k_state, (batch, input_dim), jnp.float32)
    eps = jax.random.normal(k_eps, (batch, output_dim), jnp.float32)

    action, (mu, std) = continuous_actor_forward(state, params, eps)
    jax.block_until_ready((action, mu, std))

    # Pure-JAX reference with the same bf16 weight quantization / f32 accum.
    hid_pad = params["w_fc_t"].shape[0]
    w_fc = params["w_fc_t"]
    w_hd = params["w_head_t"]
    bias = params["bias"]
    b_fc = bias[:hid_pad, 0][None, :]                      # (1, 128)
    b_hd = bias[hid_pad:, 0][None, :]                      # (1, 8)

    x = jnp.maximum(
        jnp.dot(state.astype(jnp.bfloat16), w_fc.T,
                preferred_element_type=jnp.float32) + b_fc, 0.0)
    heads = jnp.tanh(
        jnp.dot(x.astype(jnp.bfloat16), w_hd.T,
                preferred_element_type=jnp.float32) + b_hd)
    mu_ref = heads[:, :output_dim]
    std_ref = jnp.exp(heads[:, output_dim:])
    act_ref = mu_ref + std_ref * eps

    assert bool(jnp.allclose(mu, mu_ref, atol=5e-5)), "mu mismatch"
    assert bool(jnp.allclose(std, std_ref, atol=5e-5)), "std mismatch"
    assert bool(jnp.allclose(action, act_ref, atol=5e-5)), "action mismatch"

    print("KERNEL_OK")
</pallas_src>

<mosaic_0001>
module attributes {stable_mosaic.version = 11 : i64} {
  func.func @actor_kernel(%arg0: i32, %arg1: memref<16x2xf32, #tpu.memory_space<vmem>>, %arg2: memref<128x16xbf16, #tpu.memory_space<vmem>>, %arg3: memref<8x128xbf16, #tpu.memory_space<vmem>>, %arg4: memref<136x1xf32, #tpu.memory_space<vmem>>, %arg5: memref<4x2xf32, #tpu.memory_space<vmem>>, %arg6: memref<12x2xf32, #tpu.memory_space<vmem>>) attributes {dimension_semantics = [#tpu.dimension_semantics<parallel>], iteration_bounds = array<i64: 1>, scalar_prefetch = 0 : i64, scratch_operands = 0 : i64, tpu.core_type = #tpu.core_type<tc>, window_params = [{transform_indices = @transform_0, window_bounds = array<i64: 16, 2>}, {pipeline_mode = #tpu.pipeline_mode<synchronous>, transform_indices = @transform_1, window_bounds = array<i64: 128, 16>}, {pipeline_mode = #tpu.pipeline_mode<synchronous>, transform_indices = @transform_2, window_bounds = array<i64: 8, 128>}, {pipeline_mode = #tpu.pipeline_mode<synchronous>, transform_indices = @transform_3, window_bounds = array<i64: 136, 1>}, {transform_indices = @transform_4, window_bounds = array<i64: 4, 2>}, {transform_indices = @transform_5, window_bounds = array<i64: 12, 2>}]} {
    %c0 = arith.constant 0 : index
    %c0_0 = arith.constant 0 : index
    %0 = vector.load %arg4[%c0, %c0_0] : memref<136x1xf32, #tpu.memory_space<vmem>>, vector<128x1xf32>
    %c128 = arith.constant 128 : index
    %c0_1 = arith.constant 0 : index
    %1 = vector.load %arg4[%c128, %c0_1] : memref<136x1xf32, #tpu.memory_space<vmem>>, vector<8x1xf32>
    %c0_2 = arith.constant 0 : index
    %c0_3 = arith.constant 0 : index
    %2 = vector.load %arg1[%c0_2, %c0_3] : memref<16x2xf32, #tpu.memory_space<vmem>>, vector<16x2xf32>
    %3 = arith.truncf %2 : vector<16x2xf32> to vector<16x2xbf16>
    %c0_4 = arith.constant 0 : index
    %c0_5 = arith.constant 0 : index
    %4 = vector.load %arg2[%c0_4, %c0_5] : memref<128x16xbf16, #tpu.memory_space<vmem>>, vector<128x16xbf16>
    %cst = arith.constant dense<0.000000e+00> : vector<128x2xf32>
    %5 = tpu.matmul %4, %3, %cst {dimension_numbers = #tpu.dot_dimension_numbers<[1], [0], [0], [1], [0, 0, 1, 1], [], []>} : vector<128x16xbf16>, vector<16x2xbf16>, vector<128x2xf32> -> vector<128x2xf32>
    %6 = vector.broadcast %0 : vector<128x1xf32> to vector<128x2xf32>
    %7 = arith.addf %5, %6 : vector<128x2xf32>
    %cst_6 = arith.constant 0.000000e+00 : f32
    %8 = vector.broadcast %cst_6 : f32 to vector<128x2xf32>
    %9 = arith.maximumf %7, %8 : vector<128x2xf32>
    %c0_7 = arith.constant 0 : index
    %c0_8 = arith.constant 0 : index
    %10 = vector.load %arg3[%c0_7, %c0_8] : memref<8x128xbf16, #tpu.memory_space<vmem>>, vector<8x128xbf16>
    %11 = arith.truncf %9 : vector<128x2xf32> to vector<128x2xbf16>
    %cst_9 = arith.constant dense<0.000000e+00> : vector<8x2xf32>
    %12 = tpu.matmul %10, %11, %cst_9 {dimension_numbers = #tpu.dot_dimension_numbers<[1], [0], [0], [1], [0, 0, 1, 1], [], []>} : vector<8x128xbf16>, vector<128x2xbf16>, vector<8x2xf32> -> vector<8x2xf32>
    %13 = vector.broadcast %1 : vector<8x1xf32> to vector<8x2xf32>
    %14 = arith.addf %12, %13 : vector<8x2xf32>
    %15 = math.tanh %14 : vector<8x2xf32>
    %16 = vector.extract_strided_slice %15 {offsets = [0, 0], sizes = [4, 2], strides = [1, 1]} : vector<8x2xf32> to vector<4x2xf32>
    %17 = vector.extract_strided_slice %15 {offsets = [4, 0], sizes = [4, 2], strides = [1, 1]} : vector<8x2xf32> to vector<4x2xf32>
    %18 = math.exp %17 : vector<4x2xf32>
    %c0_10 = arith.constant 0 : index
    %c0_11 = arith.constant 0 : index
    %19 = vector.load %arg5[%c0_10, %c0_11] : memref<4x2xf32, #tpu.memory_space<vmem>>, vector<4x2xf32>
    %20 = arith.mulf %18, %19 : vector<4x2xf32>
    %21 = arith.addf %16, %20 : vector<4x2xf32>
    %c0_12 = arith.constant 0 : index
    %c0_13 = arith.constant 0 : index
    %22 = vector.load %arg6[%c0_12, %c0_13] : memref<12x2xf32, #tpu.memory_space<vmem>>, vector<4x2xf32>
    tpu.vector_store %arg6[%c0_12, %c0_13], %21 {strides = array<i32>} : memref<12x2xf32, #tpu.memory_space<vmem>>, vector<4x2xf32>,
    %c4 = arith.constant 4 : index
    %c0_14 = arith.constant 0 : index
    %23 = vector.load %arg6[%c4, %c0_14] : memref<12x2xf32, #tpu.memory_space<vmem>>, vector<4x2xf32>
    tpu.vector_store %arg6[%c4, %c0_14], %16 {strides = array<i32>} : memref<12x2xf32, #tpu.memory_space<vmem>>, vector<4x2xf32>,
    %c8 = arith.constant 8 : index
    %c0_15 = arith.constant 0 : index
    %24 = vector.load %arg6[%c8, %c0_15] : memref<12x2xf32, #tpu.memory_space<vmem>>, vector<4x2xf32>
    tpu.vector_store %arg6[%c8, %c0_15], %18 {strides = array<i32>} : memref<12x2xf32, #tpu.memory_space<vmem>>, vector<4x2xf32>,
    return
  }
  func.func @transform_0(%arg0: i32) -> (i32, i32) {
    %c0_i32 = arith.constant 0 : i32
    %c0_i32_0 = arith.constant 0 : i32
    return %c0_i32, %arg0 : i32, i32
  }
  func.func @transform_1(%arg0: i32) -> (i32, i32) {
    %c0_i32 = arith.constant 0 : i32
    %c0_i32_0 = arith.constant 0 : i32
    %c0_i32_1 = arith.constant 0 : i32
    return %c0_i32, %c0_i32_0 : i32, i32
  }
  func.func @transform_2(%arg0: i32) -> (i32, i32) {
    %c0_i32 = arith.constant 0 : i32
    %c0_i32_0 = arith.constant 0 : i32
    %c0_i32_1 = arith.constant 0 : i32
    return %c0_i32, %c0_i32_0 : i32, i32
  }
  func.func @transform_3(%arg0: i32) -> (i32, i32) {
    %c0_i32 = arith.constant 0 : i32
    %c0_i32_0 = arith.constant 0 : i32
    %c0_i32_1 = arith.constant 0 : i32
    return %c0_i32, %c0_i32_0 : i32, i32
  }
  func.func @transform_4(%arg0: i32) -> (i32, i32) {
    %c0_i32 = arith.constant 0 : i32
    %c0_i32_0 = arith.constant 0 : i32
    return %c0_i32, %arg0 : i32, i32
  }
  func.func @transform_5(%arg0: i32) -> (i32, i32) {
    %c0_i32 = arith.constant 0 : i32
    %c0_i32_0 = arith.constant 0 : i32
    return %c0_i32, %arg0 : i32, i32
  }
}

</mosaic_0001>

<bundles_post_ra>
// kernel: tpu_custom_call.1
= control target key start
LH: loop header
LB: loop body
LE: loop exit
PB: predicated region body
PF: predicated region fallthrough
CT: control target
= control target key end

     0   :  { %vm177_vm0 = vcmask 130048   ;;  %v479_v2 = vmov 0   ;;  %v480_v29 = vmov 0.0   ;;  %vm481_vm1 = vmmov 0   ;;  %s625_s0 = inlined_call_operand.vmem [shape: f32[16,2], index: 0, kind: input, shape index: {}]   ;;  %s626_s1 = inlined_call_operand.vmem [shape: bf16[128,16], index: 1, kind: input, shape index: {}]   ;;  %s627_s3 = inlined_call_operand.vmem [shape: f32[136,1], index: 3, kind: input, shape index: {}]   ;;  %s628_s2 = inlined_call_operand.vmem [shape: bf16[8,128], index: 2, kind: input, shape index: {}]   ;;  %s629_s5 = inlined_call_operand.vmem [shape: f32[12,2], index: 5, kind: output, shape index: {}]   ;;  %s630_s4 = inlined_call_operand.vmem [shape: f32[4,2], index: 4, kind: input, shape index: {}]  }
   0x1   :  { %v38_v0 = vld [vmem:[%s625_s0] sm:$0xff]  ;;  %v39_v1 = vld [vmem:[%s625_s0 + $0x8] sm:$0xff]  ;;  %465 = vset.pattern.permute.xlu0 %v479_v2  ;;  %466 = vset.pattern.permute.xlu1 %v479_v2  ;;  %v469_v6 = vld [vmem:[%s626_s1 + $0x10] sm:$0xff]   ;;  %vm381_vm2 = vcmask 11264   ;;  %vm384_vm3 = vcmask 15364  }
   0x2   :  { %v40_v3 = vpack.c.bf16 %v39_v1, %v38_v0  ;;  %v467_v4 = vld [vmem:[%s626_s1] sm:$0xff]   ;;  %v468_v5 = vld [vmem:[%s626_s1 + $0x8] sm:$0xff]   ;;  %v23_v8 = vld [vmem:[%s627_s3 + $0x10] sm:$0xff]  ;;  %442 = vmatprep.subr.bf16.mxu1 %v480_v29  ;;  %458 = vmatprep.mubr.msk.bf16.mxu1 %vm481_vm1, %v480_v29 }
   0x3   :  { %426 = vmatprep.mubr.msk.bf16.mxu0 %vm177_vm0, %v467_v4  ;;  %v21_v7 = vld [vmem:[%s627_s3] sm:$0xff]  ;;  %v22_v9 = vld [vmem:[%s627_s3 + $0x8] sm:$0xff]  ;;  %69 = vperm.xlu1 %466, %v23_v8   ;;  %v470_v10 = vld [vmem:[%s626_s1 + $0x18] sm:$0xff]  }
   0x4   :  { %424 = vmatprep.subr.bf16.mxu0 %v40_v3  ;;  %59 = vperm.xlu0 %465, %v21_v7   ;;  %v24_v11 = vld [vmem:[%s627_s3 + $0x18] sm:$0xff]  ;;  %v471_v12 = vld [vmem:[%s626_s1 + $0x20] sm:$0xff]   ;;  %v26_v14 = vld [vmem:[%s627_s3 + $0x28] sm:$0xff] }
   0x5   :  { %425 = vmatpush3.bf16.msra.mxu0 %v40_v3  ;;  %v25_v13 = vld [vmem:[%s627_s3 + $0x20] sm:$0xff]  ;;  %v27_v15 = vld [vmem:[%s627_s3 + $0x30] sm:$0xff]  ;;  %v472_v16 = vld [vmem:[%s626_s1 + $0x28] sm:$0xff]  }
   0x6   :  { %v28_v17 = vld [vmem:[%s627_s3 + $0x38] sm:$0xff]  ;;  %v473_v18 = vld [vmem:[%s626_s1 + $0x30] sm:$0xff]   ;;  %v29_v19 = vld [vmem:[%s627_s3 + $0x40] sm:$0xff] }
   0x7   :  { %74 = vperm.xlu1 %466, %v24_v11   ;;  %v30_v20 = vld [vmem:[%s627_s3 + $0x48] sm:$0xff]  ;;  %v31_v21 = vld [vmem:[%s627_s3 + $0x50] sm:$0xff]  ;;  %v474_v22 = vld [vmem:[%s626_s1 + $0x38] sm:$0xff]  }
   0x8   :  { %427 = vmatmul.mubr.msk.bf16.vlgmr.msra.gmra.mrb[0].mxu0 %vm177_vm0, %v468_v5  ;;  %64 = vperm.xlu0 %465, %v22_v9   ;;  %v32_v23 = vld [vmem:[%s627_s3 + $0x58] sm:$0xff]  ;;  %v33_v24 = vld [vmem:[%s627_s3 + $0x60] sm:$0xff]  ;;  %v34_v25 = vld [vmem:[%s627_s3 + $0x68] sm:$0xff] }
   0x9   :  { %430 = vmatprep.mubr.msk.bf16.mxu0 %vm177_vm0, %v469_v6  ;;  %v35_v26 = vld [vmem:[%s627_s3 + $0x70] sm:$0xff]  ;;  %v36_v27 = vld [vmem:[%s627_s3 + $0x78] sm:$0xff]  ;;  %v37_v28 = vld [vmem:[%s627_s3 + $0x80] sm:$0xff] }
   0xb   :  { %84 = vperm.xlu1 %466, %v26_v14  }
   0xc   :  { %79 = vperm.xlu0 %465, %v25_v13  }
   0xf   :  { %94 = vperm.xlu1 %466, %v28_v17  }
  0x10   :  { %431 = vmatmul.mubr.msk.bf16.gmra.mrb[4].mxu0 %vm177_vm0, %v470_v10  ;;  %89 = vperm.xlu0 %465, %v27_v15  }
  0x11   :  { %434 = vmatprep.mubr.msk.bf16.mxu0 %vm177_vm0, %v471_v12 }
  0x13   :  { %104 = vperm.xlu1 %466, %v30_v20  }
  0x14   :  { %99 = vperm.xlu0 %465, %v29_v19  }
  0x17   :  { %114 = vperm.xlu1 %466, %v32_v23  }
  0x18   :  { %435 = vmatmul.mubr.msk.bf16.gmra.mrb[8].mxu0 %vm177_vm0, %v472_v16  ;;  %109 = vperm.xlu0 %465, %v31_v21  }
  0x19   :  { %438 = vmatprep.mubr.msk.bf16.mxu0 %vm177_vm0, %v473_v18 }
  0x1b   :  { %124 = vperm.xlu1 %466, %v34_v25  }
  0x1c   :  { %119 = vperm.xlu0 %465, %v33_v24  }
  0x1f   :  { %134 = vperm.xlu1 %466, %v36_v27  }
  0x20   :  { %439 = vmatmul.mubr.msk.bf16.gmra.mrb[12].mxu0 %vm177_vm0, %v474_v22  ;;  %129 = vperm.xlu0 %465, %v35_v26  }
  0x24   :  { %326 = vperm.xlu0 %465, %v37_v28  }
  0x82   :  { %v70_v31 = vpop.permute.xlu1 %69 }
  0x83   :  { %v60_v30 = vpop.permute.xlu0 %59 }
  0x86   :  { %v75_v33 = vpop.permute.xlu1 %74 }
  0x87   :  { %v65_v32 = vpop.permute.xlu0 %64 }
  0x8a   :  { %v85_v35 = vpop.permute.xlu1 %84 }
  0x8b   :  { %v80_v34 = vpop.permute.xlu0 %79 }
  0x8e   :  { %v95_v40 = vpop.permute.xlu1 %94 }
  0x8f   :  { %v90_v36 = vpop.permute.xlu0 %89 }
  0x92   :  { %v105_v52 = vpop.permute.xlu1 %104 }
  0x93   :  { %v100_v48 = vpop.permute.xlu0 %99 }
  0x96   :  { %v115_v1 = vpop.permute.xlu1 %114 }
  0x97   :  { %v110_v61 = vpop.permute.xlu0 %109 }
  0x9a   :  { %v125_v14 = vpop.permute.xlu1 %124 }
  0x9b   :  { %v120_v9 = vpop.permute.xlu0 %119 }
  0x9e   :  { %v135_v26 = vpop.permute.xlu1 %134 }
  0x9f   :  { %v130_v21 = vpop.permute.xlu0 %129 }
  0xdb   :  { %v428_v37 = vpop.f32.mrb[0].mxu0 }
  0xdc   :  { %v245_v38 = vadd.f32 %v428_v37, %v70_v31  ;;  %v236_v39 = vpop.f32.mrb[1].mxu0 }
  0xdd   :  { %v237_v41 = vadd.f32 %v236_v39, %v60_v30  ;;  %v429_v42 = vpop.f32.mrb[2].mxu0  ;;  %v315_v39 = vld [vmem:[%s628_s2] sm:$0xf] }
  0xde   :  { %v248_v43 = vadd.f32 %v429_v42, %v75_v33  ;;  %v239_v44 = vpop.f32.mrb[3].mxu0  ;;  %v301_v46 = vmax.f32 %v245_v38, 0.0 }
  0xdf   :  { %v240_v45 = vadd.f32 %v239_v44, %v65_v32  ;;  %v299_v49 = vmax.f32 %v237_v41, 0.0 }
  0xe0   :  { %v302_v47 = vmax.f32 %v248_v43, 0.0 }
  0xe1   :  { %v300_v50 = vmax.f32 %v240_v45, 0.0 }
  0xe2   :  { %v317_v51 = vpack.c.bf16 %v302_v47, %v301_v46 }
  0xe3   :  { %v432_v53 = vpop.f32.mrb[4].mxu0  ;;  %v316_v54 = vpack.c.bf16 %v300_v50, %v299_v49 }
  0xe4   :  { %v261_v55 = vadd.f32 %v432_v53, %v90_v36  ;;  %v252_v56 = vpop.f32.mrb[5].mxu0 }
  0xe5   :  { %v253_v57 = vadd.f32 %v252_v56, %v80_v34  ;;  %v433_v58 = vpop.f32.mrb[6].mxu0  ;;  %443 = vmatpush3.bf16.msra.mxu1 %v316_v54 }
  0xe6   :  { %v264_v59 = vadd.f32 %v433_v58, %v95_v40  ;;  %v255_v60 = vpop.f32.mrb[7].mxu0  ;;  %444 = vmatprep.subr.bf16.mxu1 %v480_v29  ;;  %v305_v63 = vmax.f32 %v261_v55, 0.0  ;;  %v327_v40 = vpop.permute.xlu0 %326 }
  0xe7   :  { %v256_v62 = vadd.f32 %v255_v60, %v85_v35  ;;  %v303_v2 = vmax.f32 %v253_v57, 0.0 }
  0xe8   :  { %v306_v0 = vmax.f32 %v264_v59, 0.0 }
  0xe9   :  { %v304_v3 = vmax.f32 %v256_v62, 0.0  ;;  %445 = vmatpush3.bf16.msra.mxu1 %v317_v51 }
  0xea   :  { %v319_v4 = vpack.c.bf16 %v306_v0, %v305_v63  ;;  %446 = vmatprep.subr.bf16.mxu1 %v480_v29 }
  0xeb   :  { %v318_v5 = vpack.c.bf16 %v304_v3, %v303_v2  ;;  %v436_v6 = vpop.f32.mrb[8].mxu0 }
  0xec   :  { %v277_v7 = vadd.f32 %v436_v6, %v110_v61  ;;  %v268_v8 = vpop.f32.mrb[9].mxu0 }
  0xed   :  { %v269_v10 = vadd.f32 %v268_v8, %v100_v48  ;;  %v437_v11 = vpop.f32.mrb[10].mxu0  ;;  %447 = vmatpush3.bf16.msra.mxu1 %v318_v5 }
  0xee   :  { %v280_v12 = vadd.f32 %v437_v11, %v115_v1  ;;  %v271_v13 = vpop.f32.mrb[11].mxu0  ;;  %448 = vmatprep.subr.bf16.mxu1 %v480_v29  ;;  %v309_v16 = vmax.f32 %v277_v7, 0.0 }
  0xef   :  { %v272_v15 = vadd.f32 %v271_v13, %v105_v52  ;;  %v307_v18 = vmax.f32 %v269_v10, 0.0 }
  0xf0   :  { %v310_v17 = vmax.f32 %v280_v12, 0.0 }
  0xf1   :  { %v308_v19 = vmax.f32 %v272_v15, 0.0  ;;  %449 = vmatpush3.bf16.msra.mxu1 %v319_v4 }
  0xf2   :  { %v321_v20 = vpack.c.bf16 %v310_v17, %v309_v16  ;;  %450 = vmatprep.subr.bf16.mxu1 %v480_v29 }
  0xf3   :  { %v320_v22 = vpack.c.bf16 %v308_v19, %v307_v18  ;;  %v440_v23 = vpop.f32.mrb[12].mxu0 }
  0xf4   :  { %v293_v24 = vadd.f32 %v440_v23, %v130_v21  ;;  %v284_v25 = vpop.f32.mrb[13].mxu0 }
  0xf5   :  { %v285_v27 = vadd.f32 %v284_v25, %v120_v9  ;;  %v441_v28 = vpop.f32.mrb[14].mxu0  ;;  %451 = vmatpush3.bf16.msra.mxu1 %v320_v22 }
  0xf6   :  { %v296_v30 = vadd.f32 %v441_v28, %v135_v26  ;;  %v287_v31 = vpop.f32.mrb[15].mxu0  ;;  %452 = vmatprep.subr.bf16.mxu1 %v480_v29  ;;  %v313_v33 = vmax.f32 %v293_v24, 0.0 }
  0xf7   :  { %v288_v32 = vadd.f32 %v287_v31, %v125_v14  ;;  %v311_v35 = vmax.f32 %v285_v27, 0.0 }
  0xf8   :  { %v314_v34 = vmax.f32 %v296_v30, 0.0 }
  0xf9   :  { %v312_v36 = vmax.f32 %v288_v32, 0.0  ;;  %453 = vmatpush3.bf16.msra.mxu1 %v321_v20 }
  0xfa   :  { %v323_v37 = vpack.c.bf16 %v314_v34, %v313_v33  ;;  %454 = vmatprep.subr.bf16.mxu1 %v480_v29 }
  0xfb   :  { %v322_v38 = vpack.c.bf16 %v312_v36, %v311_v35 }
  0xfd   :  { %455 = vmatpush3.bf16.msra.mxu1 %v322_v38 }
  0xfe   :  { %456 = vmatprep.subr.bf16.mxu1 %v480_v29  ;;  %v372_v29 = vld [vmem:[%s630_s4] sm:$0xf] }
  0xff   :  { %v374_v48 = vrot.slane %v372_v29, 4 }
 0x101   :  { %457 = vmatpush3.bf16.msra.mxu1 %v323_v37 }
 0x104   :  { %459 = vmatmul.mubr.bf16.vlgmr.msra.gmra.mrb[0].mxu1 %v315_v39 }
 0x1d7   :  { %v363_v41 = vpop.f32.mrb[0].mxu1 }
 0x1d8   :  { %v364_v42 = vadd.f32 %v363_v41, %v327_v40  ;;  %v460_v43 = vpop.f32.mrb[1].mxu1 }
 0x1d9   :  { %v366_v44 = vpop.f32.mrb[2].mxu1 }
 0x1da   :  { %475 = vtanh.f32 %v364_v42  ;;  %v461_v45 = vpop.f32.mrb[3].mxu1 }
 0x1e4   :  { %v476_v46 = vpop.eup %475 }
 0x1e5   :  { %v370_v47 = vmul.f32 1.442695, %v476_v46  ;;  %383 = vst.msk [vmem:[%s629_s5 + $0x4] sm:$0xf] %vm381_vm2, %v476_v46 }
 0x1e7   :  { %477 = vpow2.f32 %v370_v47 }
 0x1f1   :  { %v478_v49 = vpop.eup %477 }
 0x1f2   :  { %v376_v50 = vmul.f32 %v478_v49, %v374_v48  ;;  %385 = vst.msk [vmem:[%s629_s5 + $0x4] sm:$0xf0] %vm384_vm3, %v478_v49 }
 0x1f4   :  { %v378_v51 = vrot.slane %v376_v50, 4 }
 0x1f6   :  { %v380_v52 = vadd.f32 %v476_v46, %v378_v51 }
 0x1f8   :  { %382 = vst.msk [vmem:[%s629_s5] sm:$0xf] %vm381_vm2, %v380_v52 }

</bundles_post_ra>
